<compile_context>
chip_gen: v7x
topology: tpu7x:2x2x1
jax: 0.10.0
libtpu: 0.0.40
codegen_flags: <defaults>
</compile_context>

<pallas_src>
import jax
import jax.numpy as jnp
from jax.experimental import pallas as pl
from jax.experimental.pallas import tpu as pltpu

NEG_INF = -1e30  # finite "minus infinity": exp() underflows to exactly 0 in f32


# ------------------------------- helpers ------------------------------------

def _round_up(n, m):
    return ((n + m - 1) // m) * m


def _log_softmax(z):
    # numerically-stable log_softmax over the last (class/lane) axis, in f32.
    m = jnp.max(z, axis=-1, keepdims=True)
    s = jnp.sum(jnp.exp(z - m), axis=-1, keepdims=True)
    return z - m - jnp.log(s)


# ----------------------------- Pallas kernel --------------------------------

def _kernel(b_ref,                    # scalar-prefetch: true batch size (SMEM int32[1])
            xi_ref, xt_ref, y_ref,    # batch-tiled inputs
            w1i_ref, w1t_ref, b1_ref, w2_ref, b2_ref, w3_ref, b3_ref,  # resident weights
            logits_ref, loss_ref):    # outputs: lane-dense logits, SMEM scalar loss
    tb = xi_ref.shape[0]
    out_pad = b3_ref.shape[1] // 2
    cdt = w1i_ref.dtype               # matmul operand dtype (f32 or bf16)

    # Layer 1: two MXU pushes, one per modality (no concatenated X needed).
    xi = xi_ref[...].astype(cdt)
    xt = xt_ref[...].astype(cdt)
    h = (jnp.dot(xi, w1i_ref[...], preferred_element_type=jnp.float32)
         + jnp.dot(xt, w1t_ref[...], preferred_element_type=jnp.float32)
         + b1_ref[...])
    h = jnp.maximum(h, 0.0)

    # Layers 2/3: block-diagonal packed (both towers in one push each).
    h = jnp.dot(h.astype(cdt), w2_ref[...],
                preferred_element_type=jnp.float32) + b2_ref[...]
    h = jnp.maximum(h, 0.0)
    z = jnp.dot(h.astype(cdt), w3_ref[...],
                preferred_element_type=jnp.float32) + b3_ref[...]

    # z: [tb, 2*out_pad]; split at the 128-lane boundary.  Padded class columns
    # carry bias NEG_INF (f32) -> they vanish in each tower's softmax.
    logits = _log_softmax(z[:, :out_pad]) + _log_softmax(z[:, out_pad:])
    logits_ref[...] = logits  # lane-dense (out_pad % 128 == 0), edge-masked store

    # Cross-entropy with integer targets: lse(logits) - logits[y].
    m = jnp.max(logits, axis=-1, keepdims=True)
    lse = m + jnp.log(jnp.sum(jnp.exp(logits - m), axis=-1, keepdims=True))
    cls = jax.lax.broadcasted_iota(jnp.int32, logits.shape, 1)
    picked = jnp.sum(jnp.where(cls == y_ref[...], logits, 0.0),
                     axis=-1, keepdims=True)
    nll = lse - picked                                       # [tb, 1]

    # mask rows that only exist because the last batch block is ragged
    b_true = b_ref[0]
    row = pl.program_id(0) * tb + jax.lax.broadcasted_iota(jnp.int32, (tb, 1), 0)
    part = jnp.sum(jnp.where(row < b_true, nll, 0.0))        # block partial sum
    loss_ref[0, 0] = part                                     # SMEM scalar store


# --------------------------- host-side packing -------------------------------

def pack_params(p, output_dim, compute_dtype=None):
    """Pack the 12 per-tower tensors into 7 fused arrays (do this ONCE).

    Layer 1 is split per modality (w1i/w1t, each zero-padded to the fused
    hidden width) so the kernel never needs a concatenated X.  Layers 2/3 are
    block-diagonal.  All widths are padded to multiples of 128 (lane-dense).
    Matmul operands use `compute_dtype`; biases stay f32 (NEG_INF safety).
    If compute_dtype is None, bf16 is chosen automatically once the fused
    hidden width is >= 256, otherwise f32.
    """
    h1 = p["wi1"].shape[1]
    h2 = p["wi2"].shape[1]
    d_img = p["wi1"].shape[0]
    d_txt = p["wt1"].shape[0]
    out_pad = _round_up(output_dim, 128)
    h1_pad = _round_up(2 * h1, 128)
    h2_pad = _round_up(2 * h2, 128)

    if compute_dtype is None:
        compute_dtype = jnp.bfloat16 if max(h1_pad, h2_pad) >= 256 else jnp.float32

    w1i = jnp.zeros((d_img, h1_pad), jnp.float32).at[:, :h1].set(p["wi1"])
    w1t = jnp.zeros((d_txt, h1_pad), jnp.float32).at[:, h1:2 * h1].set(p["wt1"])
    b1 = jnp.zeros((1, h1_pad), jnp.float32)
    b1 = b1.at[:, :h1].set(p["bi1"]).at[:, h1:2 * h1].set(p["bt1"])

    w2 = jnp.zeros((h1_pad, h2_pad), jnp.float32)
    w2 = w2.at[:h1, :h2].set(p["wi2"]).at[h1:2 * h1, h2:2 * h2].set(p["wt2"])
    b2 = jnp.zeros((1, h2_pad), jnp.float32)
    b2 = b2.at[:, :h2].set(p["bi2"]).at[:, h2:2 * h2].set(p["bt2"])

    w3 = jnp.zeros((h2_pad, 2 * out_pad), jnp.float32)
    w3 = w3.at[:h2, :output_dim].set(p["wi3"])
    w3 = w3.at[h2:2 * h2, out_pad:out_pad + output_dim].set(p["wt3"])
    b3 = jnp.full((1, 2 * out_pad), NEG_INF, jnp.float32)
    b3 = b3.at[0, :output_dim].set(p["bi3"][0])
    b3 = b3.at[0, out_pad:out_pad + output_dim].set(p["bt3"][0])

    return {"w1i": w1i.astype(compute_dtype), "w1t": w1t.astype(compute_dtype),
            "b1": b1,
            "w2": w2.astype(compute_dtype), "b2": b2,
            "w3": w3.astype(compute_dtype), "b3": b3,
            "output_dim": output_dim, "out_pad": out_pad}


# -------------------------------- wrapper ------------------------------------

def unimodal_classifier(x_image, x_text, y_true, packed, *, batch_tile=1024):
    """Returns {'loss', 'logits'} matching the PyTorch module forward."""
    out_dim = packed["output_dim"]
    out_pad = packed["out_pad"]

    B = x_image.shape[0]
    d_img = x_image.shape[1]
    d_txt = x_text.shape[1]
    h1_pad = packed["w1i"].shape[1]
    h2_pad = packed["w2"].shape[1]

    # Large tiles amortize per-grid-step overhead (v5e/v6e); splitting into
    # >=2 blocks whenever B allows lets v7x shard the "parallel" axis on both
    # TensorCores.  Ragged edge block is masked (no wrapper-side padding).
    tb = min(batch_tile, max(8, _round_up(pl.cdiv(B, 2), 8)))
    n_blocks = pl.cdiv(B, tb)

    y = y_true.astype(jnp.int32).reshape(B, 1)
    b_arr = jnp.full((1,), B, jnp.int32)   # scalar-prefetch: true batch size

    grid_spec = pltpu.PrefetchScalarGridSpec(
        num_scalar_prefetch=1,
        grid=(n_blocks,),
        in_specs=[
            pl.BlockSpec((tb, d_img), lambda i, b: (i, 0)),          # x_image (batch tiled)
            pl.BlockSpec((tb, d_txt), lambda i, b: (i, 0)),          # x_text  (batch tiled)
            pl.BlockSpec((tb, 1), lambda i, b: (i, 0)),              # y int32 column
            pl.BlockSpec((d_img, h1_pad), lambda i, b: (0, 0)),      # w1 image part (resident)
            pl.BlockSpec((d_txt, h1_pad), lambda i, b: (0, 0)),      # w1 text part  (resident)
            pl.BlockSpec((1, h1_pad), lambda i, b: (0, 0)),          # b1
            pl.BlockSpec((h1_pad, h2_pad), lambda i, b: (0, 0)),     # w2 (block-diag)
            pl.BlockSpec((1, h2_pad), lambda i, b: (0, 0)),          # b2
            pl.BlockSpec((h2_pad, 2 * out_pad), lambda i, b: (0, 0)),# w3 (block-diag, padded)
            pl.BlockSpec((1, 2 * out_pad), lambda i, b: (0, 0)),     # b3 (NEG_INF pad cols)
        ],
        out_specs=(
            pl.BlockSpec((tb, out_pad), lambda i, b: (i, 0)),        # lane-dense logits
            pl.BlockSpec((1, 1), lambda i, b: (i, 0),                # per-block loss scalar
                         memory_space=pltpu.MemorySpace.SMEM),
        ),
    )

    logits_full, loss_parts = pl.pallas_call(
        _kernel,
        out_shape=(
            jax.ShapeDtypeStruct((B, out_pad), jnp.float32),
            jax.ShapeDtypeStruct((n_blocks, 1), jnp.float32),
        ),
        grid_spec=grid_spec,
        compiler_params=pltpu.CompilerParams(
            dimension_semantics=("parallel",)),
    )(b_arr, x_image, x_text, y,
      packed["w1i"], packed["w1t"], packed["b1"],
      packed["w2"], packed["b2"], packed["w3"], packed["b3"])

    loss = jnp.sum(loss_parts) / B
    logits = logits_full[:, :out_dim]
    return {"loss": loss, "logits": logits}


# ------------------------- deterministic param init --------------------------

def init_mlp_params(key, in_dim, hidden_dims, out_dim, prefix):
    dims = [in_dim] + list(hidden_dims) + [out_dim]
    params = {}
    keys = jax.random.split(key, len(dims) - 1)
    for i, (d_in, d_out) in enumerate(zip(dims[:-1], dims[1:]), start=1):
        scale = 1.0 / jnp.sqrt(jnp.float32(d_in))
        params[f"{prefix}{i}"] = (
            jax.random.normal(keys[i - 1], (d_in, d_out), jnp.float32) * scale)
        params[f"{prefix.replace('w', 'b')}{i}"] = jnp.zeros((1, d_out), jnp.float32)
    return params


# ---------------------------------- main -------------------------------------

if __name__ == "__main__":
    B = 8
    IMAGE_DIM = 16
    TEXT_DIM = 32
    HIDDEN_DIMS = [32, 32]
    OUTPUT_DIM = 4

    key = jax.random.PRNGKey(0)
    k_img, k_txt, k_y, k_wi, k_wt = jax.random.split(key, 5)

    x_image = jax.random.normal(k_img, (B, IMAGE_DIM), jnp.float32)
    x_text = jax.random.normal(k_txt, (B, TEXT_DIM), jnp.float32)
    y_true = jax.random.randint(k_y, (B,), 0, OUTPUT_DIM)

    params = {}
    params.update(init_mlp_params(k_wi, IMAGE_DIM, HIDDEN_DIMS, OUTPUT_DIM, "wi"))
    params.update(init_mlp_params(k_wt, TEXT_DIM, HIDDEN_DIMS, OUTPUT_DIM, "wt"))

    # Auto dtype (f32 at these small dims -> tight correctness check).
    packed = pack_params(params, OUTPUT_DIM)
    out = unimodal_classifier(x_image, x_text, y_true, packed)
    jax.block_until_ready(out)

    # Pure-JAX reference.
    def mlp_ref(x, p, prefix):
        h = jnp.maximum(x @ p[f"{prefix}1"] + p[f"{prefix.replace('w','b')}1"], 0.0)
        h = jnp.maximum(h @ p[f"{prefix}2"] + p[f"{prefix.replace('w','b')}2"], 0.0)
        return h @ p[f"{prefix}3"] + p[f"{prefix.replace('w','b')}3"]

    logits_ref = (jax.nn.log_softmax(mlp_ref(x_image, params, "wi"), axis=-1)
                  + jax.nn.log_softmax(mlp_ref(x_text, params, "wt"), axis=-1))
    yoh = jax.nn.one_hot(y_true, OUTPUT_DIM)
    loss_ref = jnp.mean(jax.nn.logsumexp(logits_ref, axis=-1)
                        - jnp.sum(yoh * logits_ref, axis=-1))

    assert out["logits"].shape == (B, OUTPUT_DIM)
    assert jnp.allclose(out["logits"], logits_ref, atol=1e-4, rtol=1e-4)
    assert jnp.allclose(out["loss"], loss_ref, atol=1e-4, rtol=1e-4)

    # bf16-matmul-operand path (v6e/v7x MXU rate; f32 accumulation and f32
    # elementwise keeps it v5e-safe and NEG_INF-safe).  Smoke test only.
    packed_bf16 = pack_params(params, OUTPUT_DIM, compute_dtype=jnp.bfloat16)
    out_bf16 = unimodal_classifier(x_image, x_text, y_true, packed_bf16)
    jax.block_until_ready(out_bf16)
    assert out_bf16["logits"].shape == (B, OUTPUT_DIM)
    assert bool(jnp.isfinite(out_bf16["loss"]))

    print("KERNEL_OK")
</pallas_src>

<mosaic_0001>
module attributes {stable_mosaic.version = 11 : i64} {
  func.func @_kernel(%arg0: i32, %arg1: memref<1xi32, #tpu.memory_space<smem>>, %arg2: memref<8x16xf32, #tpu.memory_space<vmem>>, %arg3: memref<8x32xf32, #tpu.memory_space<vmem>>, %arg4: memref<8x1xi32, #tpu.memory_space<vmem>>, %arg5: memref<16x128xf32, #tpu.memory_space<vmem>>, %arg6: memref<32x128xf32, #tpu.memory_space<vmem>>, %arg7: memref<1x128xf32, #tpu.memory_space<vmem>>, %arg8: memref<128x128xf32, #tpu.memory_space<vmem>>, %arg9: memref<1x128xf32, #tpu.memory_space<vmem>>, %arg10: memref<128x256xf32, #tpu.memory_space<vmem>>, %arg11: memref<1x256xf32, #tpu.memory_space<vmem>>, %arg12: memref<8x128xf32, #tpu.memory_space<vmem>>, %arg13: memref<1x1xf32, #tpu.memory_space<smem>>) attributes {dimension_semantics = [#tpu.dimension_semantics<parallel>], iteration_bounds = array<i64: 1>, scalar_prefetch = 1 : i64, scratch_operands = 0 : i64, tpu.core_type = #tpu.core_type<tc>, window_params = [{transform_indices = @transform_0, window_bounds = array<i64: 8, 16>}, {transform_indices = @transform_1, window_bounds = array<i64: 8, 32>}, {transform_indices = @transform_2, window_bounds = array<i64: 8, 1>}, {pipeline_mode = #tpu.pipeline_mode<synchronous>, transform_indices = @transform_3, window_bounds = array<i64: 16, 128>}, {pipeline_mode = #tpu.pipeline_mode<synchronous>, transform_indices = @transform_4, window_bounds = array<i64: 32, 128>}, {pipeline_mode = #tpu.pipeline_mode<synchronous>, transform_indices = @transform_5, window_bounds = array<i64: 1, 128>}, {pipeline_mode = #tpu.pipeline_mode<synchronous>, transform_indices = @transform_6, window_bounds = array<i64: 128, 128>}, {pipeline_mode = #tpu.pipeline_mode<synchronous>, transform_indices = @transform_7, window_bounds = array<i64: 1, 128>}, {pipeline_mode = #tpu.pipeline_mode<synchronous>, transform_indices = @transform_8, window_bounds = array<i64: 128, 256>}, {pipeline_mode = #tpu.pipeline_mode<synchronous>, transform_indices = @transform_9, window_bounds = array<i64: 1, 256>}, {transform_indices = @transform_10, window_bounds = array<i64: 8, 128>}, {transform_indices = @transform_11, window_bounds = array<i64: 1, 1>}]} {
    %c0 = arith.constant 0 : index
    %c0_0 = arith.constant 0 : index
    %0 = vector.load %arg2[%c0, %c0_0] : memref<8x16xf32, #tpu.memory_space<vmem>>, vector<8x16xf32>
    %c0_1 = arith.constant 0 : index
    %c0_2 = arith.constant 0 : index
    %1 = vector.load %arg3[%c0_1, %c0_2] : memref<8x32xf32, #tpu.memory_space<vmem>>, vector<8x32xf32>
    %c0_3 = arith.constant 0 : index
    %c0_4 = arith.constant 0 : index
    %2 = vector.load %arg5[%c0_3, %c0_4] : memref<16x128xf32, #tpu.memory_space<vmem>>, vector<16x128xf32>
    %cst = arith.constant dense<0.000000e+00> : vector<8x128xf32>
    %3 = tpu.matmul %0, %2, %cst {dimension_numbers = #tpu.dot_dimension_numbers<[1], [0], [0], [1], [0, 0, 1, 1], [], []>} : vector<8x16xf32>, vector<16x128xf32>, vector<8x128xf32> -> vector<8x128xf32>
    %c0_5 = arith.constant 0 : index
    %c0_6 = arith.constant 0 : index
    %4 = vector.load %arg6[%c0_5, %c0_6] : memref<32x128xf32, #tpu.memory_space<vmem>>, vector<32x128xf32>
    %cst_7 = arith.constant dense<0.000000e+00> : vector<8x128xf32>
    %5 = tpu.matmul %1, %4, %cst_7 {dimension_numbers = #tpu.dot_dimension_numbers<[1], [0], [0], [1], [0, 0, 1, 1], [], []>} : vector<8x32xf32>, vector<32x128xf32>, vector<8x128xf32> -> vector<8x128xf32>
    %6 = arith.addf %3, %5 : vector<8x128xf32>
    %c0_8 = arith.constant 0 : index
    %c0_9 = arith.constant 0 : index
    %7 = vector.load %arg7[%c0_8, %c0_9] : memref<1x128xf32, #tpu.memory_space<vmem>>, vector<1x128xf32>
    %8 = vector.broadcast %7 : vector<1x128xf32> to vector<8x128xf32>
    %9 = arith.addf %6, %8 : vector<8x128xf32>
    %cst_10 = arith.constant 0.000000e+00 : f32
    %10 = vector.broadcast %cst_10 : f32 to vector<8x128xf32>
    %11 = arith.maximumf %9, %10 : vector<8x128xf32>
    %c0_11 = arith.constant 0 : index
    %c0_12 = arith.constant 0 : index
    %12 = vector.load %arg8[%c0_11, %c0_12] : memref<128x128xf32, #tpu.memory_space<vmem>>, vector<128x128xf32>
    %cst_13 = arith.constant dense<0.000000e+00> : vector<8x128xf32>
    %13 = tpu.matmul %11, %12, %cst_13 {dimension_numbers = #tpu.dot_dimension_numbers<[1], [0], [0], [1], [0, 0, 1, 1], [], []>} : vector<8x128xf32>, vector<128x128xf32>, vector<8x128xf32> -> vector<8x128xf32>
    %c0_14 = arith.constant 0 : index
    %c0_15 = arith.constant 0 : index
    %14 = vector.load %arg9[%c0_14, %c0_15] : memref<1x128xf32, #tpu.memory_space<vmem>>, vector<1x128xf32>
    %15 = vector.broadcast %14 : vector<1x128xf32> to vector<8x128xf32>
    %16 = arith.addf %13, %15 : vector<8x128xf32>
    %cst_16 = arith.constant 0.000000e+00 : f32
    %17 = vector.broadcast %cst_16 : f32 to vector<8x128xf32>
    %18 = arith.maximumf %16, %17 : vector<8x128xf32>
    %c0_17 = arith.constant 0 : index
    %c0_18 = arith.constant 0 : index
    %19 = vector.load %arg10[%c0_17, %c0_18] : memref<128x256xf32, #tpu.memory_space<vmem>>, vector<128x256xf32>
    %cst_19 = arith.constant dense<0.000000e+00> : vector<8x256xf32>
    %20 = tpu.matmul %18, %19, %cst_19 {dimension_numbers = #tpu.dot_dimension_numbers<[1], [0], [0], [1], [0, 0, 1, 1], [], []>} : vector<8x128xf32>, vector<128x256xf32>, vector<8x256xf32> -> vector<8x256xf32>
    %c0_20 = arith.constant 0 : index
    %c0_21 = arith.constant 0 : index
    %21 = vector.load %arg11[%c0_20, %c0_21] : memref<1x256xf32, #tpu.memory_space<vmem>>, vector<1x256xf32>
    %22 = vector.broadcast %21 : vector<1x256xf32> to vector<8x256xf32>
    %23 = arith.addf %20, %22 : vector<8x256xf32>
    %24 = vector.extract_strided_slice %23 {offsets = [0, 0], sizes = [8, 128], strides = [1, 1]} : vector<8x256xf32> to vector<8x128xf32>
    %cst_22 = arith.constant dense<0xFF800000> : vector<8xf32>
    %25 = vector.multi_reduction <maximumf>, %24, %cst_22 [1] : vector<8x128xf32> to vector<8xf32>
    %26 = vector.shape_cast %25 : vector<8xf32> to vector<8x1xf32>
    %27 = vector.broadcast %26 : vector<8x1xf32> to vector<8x128xf32>
    %28 = arith.subf %24, %27 : vector<8x128xf32>
    %29 = math.exp %28 : vector<8x128xf32>
    %cst_23 = arith.constant dense<0.000000e+00> : vector<8xf32>
    %30 = vector.multi_reduction <add>, %29, %cst_23 [1] : vector<8x128xf32> to vector<8xf32>
    %31 = vector.shape_cast %30 : vector<8xf32> to vector<8x1xf32>
    %32 = vector.broadcast %26 : vector<8x1xf32> to vector<8x128xf32>
    %33 = arith.subf %24, %32 : vector<8x128xf32>
    %34 = math.log %31 : vector<8x1xf32>
    %35 = vector.broadcast %34 : vector<8x1xf32> to vector<8x128xf32>
    %36 = arith.subf %33, %35 : vector<8x128xf32>
    %37 = vector.extract_strided_slice %23 {offsets = [0, 128], sizes = [8, 128], strides = [1, 1]} : vector<8x256xf32> to vector<8x128xf32>
    %cst_24 = arith.constant dense<0xFF800000> : vector<8xf32>
    %38 = vector.multi_reduction <maximumf>, %37, %cst_24 [1] : vector<8x128xf32> to vector<8xf32>
    %39 = vector.shape_cast %38 : vector<8xf32> to vector<8x1xf32>
    %40 = vector.broadcast %39 : vector<8x1xf32> to vector<8x128xf32>
    %41 = arith.subf %37, %40 : vector<8x128xf32>
    %42 = math.exp %41 : vector<8x128xf32>
    %cst_25 = arith.constant dense<0.000000e+00> : vector<8xf32>
    %43 = vector.multi_reduction <add>, %42, %cst_25 [1] : vector<8x128xf32> to vector<8xf32>
    %44 = vector.shape_cast %43 : vector<8xf32> to vector<8x1xf32>
    %45 = vector.broadcast %39 : vector<8x1xf32> to vector<8x128xf32>
    %46 = arith.subf %37, %45 : vector<8x128xf32>
    %47 = math.log %44 : vector<8x1xf32>
    %48 = vector.broadcast %47 : vector<8x1xf32> to vector<8x128xf32>
    %49 = arith.subf %46, %48 : vector<8x128xf32>
    %50 = arith.addf %36, %49 : vector<8x128xf32>
    %c0_26 = arith.constant 0 : index
    %c0_27 = arith.constant 0 : index
    %51 = vector.load %arg12[%c0_26, %c0_27] : memref<8x128xf32, #tpu.memory_space<vmem>>, vector<8x128xf32>
    tpu.vector_store %arg12[%c0_26, %c0_27], %50 {strides = array<i32>} : memref<8x128xf32, #tpu.memory_space<vmem>>, vector<8x128xf32>,
    %cst_28 = arith.constant dense<0xFF800000> : vector<8xf32>
    %52 = vector.multi_reduction <maximumf>, %50, %cst_28 [1] : vector<8x128xf32> to vector<8xf32>
    %53 = vector.shape_cast %52 : vector<8xf32> to vector<8x1xf32>
    %54 = vector.broadcast %53 : vector<8x1xf32> to vector<8x128xf32>
    %55 = arith.subf %50, %54 : vector<8x128xf32>
    %56 = math.exp %55 : vector<8x128xf32>
    %cst_29 = arith.constant dense<0.000000e+00> : vector<8xf32>
    %57 = vector.multi_reduction <add>, %56, %cst_29 [1] : vector<8x128xf32> to vector<8xf32>
    %58 = vector.shape_cast %57 : vector<8xf32> to vector<8x1xf32>
    %59 = math.log %58 : vector<8x1xf32>
    %60 = arith.addf %53, %59 : vector<8x1xf32>
    %61 = tpu.iota {dimensions = array<i32: 1>} : vector<8x128xi32>
    %c0_30 = arith.constant 0 : index
    %c0_31 = arith.constant 0 : index
    %62 = vector.load %arg4[%c0_30, %c0_31] : memref<8x1xi32, #tpu.memory_space<vmem>>, vector<8x1xi32>
    %63 = vector.broadcast %62 : vector<8x1xi32> to vector<8x128xi32>
    %64 = arith.cmpi eq, %61, %63 : vector<8x128xi32>
    %cst_32 = arith.constant 0.000000e+00 : f32
    %65 = vector.broadcast %cst_32 : f32 to vector<8x128xf32>
    %66 = arith.select %64, %50, %65 : vector<8x128xi1>, vector<8x128xf32>
    %cst_33 = arith.constant dense<0.000000e+00> : vector<8xf32>
    %67 = vector.multi_reduction <add>, %66, %cst_33 [1] : vector<8x128xf32> to vector<8xf32>
    %68 = vector.shape_cast %67 : vector<8xf32> to vector<8x1xf32>
    %69 = arith.subf %60, %68 : vector<8x1xf32>
    %c0_34 = arith.constant 0 : index
    %70 = memref.load %arg1[%c0_34] : memref<1xi32, #tpu.memory_space<smem>>
    %c8_i32 = arith.constant 8 : i32
    %71 = arith.muli %arg0, %c8_i32 : i32
    %72 = tpu.iota {dimensions = array<i32: 0>} : vector<8x1xi32>
    %73 = vector.broadcast %71 : i32 to vector<8x1xi32>
    %74 = arith.addi %73, %72 : vector<8x1xi32>
    %75 = vector.broadcast %70 : i32 to vector<8x1xi32>
    %76 = arith.cmpi slt, %74, %75 : vector<8x1xi32>
    %cst_35 = arith.constant 0.000000e+00 : f32
    %77 = vector.broadcast %cst_35 : f32 to vector<8x1xf32>
    %78 = arith.select %76, %69, %77 : vector<8x1xi1>, vector<8x1xf32>
    %79 = vector.shape_cast %78 : vector<8x1xf32> to vector<1x8x1xf32>
    %cst_36 = arith.constant dense<0.000000e+00> : vector<1xf32>
    %80 = vector.multi_reduction <add>, %79, %cst_36 [1, 2] : vector<1x8x1xf32> to vector<1xf32>
    %81 = vector.shape_cast %80 : vector<1xf32> to vector<1x1x1xf32>
    %82 = vector.extract %81[0, 0, 0] : f32 from vector<1x1x1xf32>
    %c0_37 = arith.constant 0 : index
    %c0_38 = arith.constant 0 : index
    %83 = memref.load %arg13[%c0_37, %c0_38] : memref<1x1xf32, #tpu.memory_space<smem>>
    memref.store %82, %arg13[%c0_37, %c0_38] : memref<1x1xf32, #tpu.memory_space<smem>>
    return
  }
  func.func @transform_0(%arg0: i32, %arg1: memref<1xi32, #tpu.memory_space<smem>>) -> (i32, i32) {
    %c0_i32 = arith.constant 0 : i32
    %c0_i32_0 = arith.constant 0 : i32
    return %arg0, %c0_i32 : i32, i32
  }
  func.func @transform_1(%arg0: i32, %arg1: memref<1xi32, #tpu.memory_space<smem>>) -> (i32, i32) {
    %c0_i32 = arith.constant 0 : i32
    %c0_i32_0 = arith.constant 0 : i32
    return %arg0, %c0_i32 : i32, i32
  }
  func.func @transform_2(%arg0: i32, %arg1: memref<1xi32, #tpu.memory_space<smem>>) -> (i32, i32) {
    %c0_i32 = arith.constant 0 : i32
    %c0_i32_0 = arith.constant 0 : i32
    return %arg0, %c0_i32 : i32, i32
  }
  func.func @transform_3(%arg0: i32, %arg1: memref<1xi32, #tpu.memory_space<smem>>) -> (i32, i32) {
    %c0_i32 = arith.constant 0 : i32
    %c0_i32_0 = arith.constant 0 : i32
    %c0_i32_1 = arith.constant 0 : i32
    return %c0_i32, %c0_i32_0 : i32, i32
  }
  func.func @transform_4(%arg0: i32, %arg1: memref<1xi32, #tpu.memory_space<smem>>) -> (i32, i32) {
    %c0_i32 = arith.constant 0 : i32
    %c0_i32_0 = arith.constant 0 : i32
    %c0_i32_1 = arith.constant 0 : i32
    return %c0_i32, %c0_i32_0 : i32, i32
  }
  func.func @transform_5(%arg0: i32, %arg1: memref<1xi32, #tpu.memory_space<smem>>) -> (i32, i32) {
    %c0_i32 = arith.constant 0 : i32
    %c0_i32_0 = arith.constant 0 : i32
    %c0_i32_1 = arith.constant 0 : i32
    return %c0_i32, %c0_i32_0 : i32, i32
  }
  func.func @transform_6(%arg0: i32, %arg1: memref<1xi32, #tpu.memory_space<smem>>) -> (i32, i32) {
    %c0_i32 = arith.constant 0 : i32
    %c0_i32_0 = arith.constant 0 : i32
    %c0_i32_1 = arith.constant 0 : i32
    return %c0_i32, %c0_i32_0 : i32, i32
  }
  func.func @transform_7(%arg0: i32, %arg1: memref<1xi32, #tpu.memory_space<smem>>) -> (i32, i32) {
    %c0_i32 = arith.constant 0 : i32
    %c0_i32_0 = arith.constant 0 : i32
    %c0_i32_1 = arith.constant 0 : i32
    return %c0_i32, %c0_i32_0 : i32, i32
  }
  func.func @transform_8(%arg0: i32, %arg1: memref<1xi32, #tpu.memory_space<smem>>) -> (i32, i32) {
    %c0_i32 = arith.constant 0 : i32
    %c0_i32_0 = arith.constant 0 : i32
    %c0_i32_1 = arith.constant 0 : i32
    return %c0_i32, %c0_i32_0 : i32, i32
  }
  func.func @transform_9(%arg0: i32, %arg1: memref<1xi32, #tpu.memory_space<smem>>) -> (i32, i32) {
    %c0_i32 = arith.constant 0 : i32
    %c0_i32_0 = arith.constant 0 : i32
    %c0_i32_1 = arith.constant 0 : i32
    return %c0_i32, %c0_i32_0 : i32, i32
  }
  func.func @transform_10(%arg0: i32, %arg1: memref<1xi32, #tpu.memory_space<smem>>) -> (i32, i32) {
    %c0_i32 = arith.constant 0 : i32
    %c0_i32_0 = arith.constant 0 : i32
    return %arg0, %c0_i32 : i32, i32
  }
  func.func @transform_11(%arg0: i32, %arg1: memref<1xi32, #tpu.memory_space<smem>>) -> (i32, i32) {
    %c0_i32 = arith.constant 0 : i32
    %c0_i32_0 = arith.constant 0 : i32
    return %arg0, %c0_i32 : i32, i32
  }
}

</mosaic_0001>

<bundles_post_ra>
// kernel: tpu_custom_call.1
= control target key start
LH: loop header
LB: loop body
LE: loop exit
PB: predicated region body
PF: predicated region fallthrough
CT: control target
= control target key end

     0   :  { %19 = vsyncpa [#allocation5], 0  ;;  %s1054_s0 = inlined_call_operand.<no memory space> [shape: s32[1], index: 0, kind: input, shape index: {}]   ;;  %s1055_s1 = inlined_call_operand.vmem [shape: f32[8,16], index: 1, kind: input, shape index: {}]   ;;  %s1056_s2 = inlined_call_operand.hbm [shape: f32[8,32], index: 2, kind: input, shape index: {}]   ;;  %s1057_s3 = inlined_call_operand.vmem [shape: s32[8,1], index: 3, kind: input, shape index: {}]   ;;  %s1058_s4 = inlined_call_operand.vmem [shape: f32[16,128], index: 4, kind: input, shape index: {}]   ;;  %s1059_s5 = inlined_call_operand.hbm [shape: f32[32,128], index: 5, kind: input, shape index: {}]   ;;  %s1060_s6 = inlined_call_operand.vmem [shape: f32[1,128], index: 6, kind: input, shape index: {}]   ;;  %s1061_s7 = inlined_call_operand.hbm [shape: f32[128,128], index: 7, kind: input, shape index: {}]   ;;  %s1062_s8 = inlined_call_operand.vmem [shape: f32[1,128], index: 8, kind: input, shape index: {}]   ;;  %s1063_s9 = inlined_call_operand.hbm [shape: f32[128,256], index: 9, kind: input, shape index: {}]   ;;  %s1064_s10 = inlined_call_operand.vmem [shape: f32[1,256], index: 10, kind: input, shape index: {}]   ;;  %s1065_s11 = inlined_call_operand.hbm [shape: f32[8,128], index: 11, kind: output, shape index: {0}]   ;;  %s1066_s12 = inlined_call_operand.hbm [shape: f32[1,1], index: 12, kind: output, shape index: {1}]  }
   0x1   :  { %20 = vsyncpa [#allocation9], 0 }
   0x2   :  { %21 = vsyncpa [#allocation12], 0 }
   0x3   :  { %22 = vsyncpa [#allocation6], 0 }
   0x4   :  { %23 = vsyncpa [#allocation7], 0  ;;  %s870_s21 = smov [#allocation8]   ;;  %s740_s25 = scalar_lea.hbm %s1059_s5, 512 }
   0x5   :  { %s45_s22 = sshll.u32 %s870_s21, 4  ;;  %p741_p0 = scmp.ne.s32.totalorder %s1059_s5, %s740_s25  ;;  %s46_s22 = int_to_ptr.vmem [resolvable:$true] %s45_s22 }
   0x6   :  { %p744_p1 = scmp.lt.u32.totalorder %s740_s25, %s1059_s5 }
   0x8   :  { %p746_p2 = pnand %p744_p1, %p741_p0 }
   0xa   :  { %749 = shalt.err (!%p746_p2)
}
   0xb   :  { %s750_s30 = scalar_lea.vmem %s46_s22, 512  ;;  %p755_p4 = scmp.lt.s32.totalorder %s46_s22, %s46_s22 }
   0xc   :  { %p751_p3 = scmp.ne.s32.totalorder %s46_s22, %s750_s30  ;;  %p756_p5 = scmp.lt.s32.totalorder %s750_s30, %s750_s30 }
   0xe   :  { %p757_p6 = por %p756_p5, %p755_p4 }
  0x10   :  { %p758_p7 = pnand %p757_p6, %p751_p3 }
  0x12   :  { %761 = shalt.err (!%p758_p7)
}
  0x13   :  { %s871_s13 = smov 128   ;;  %s872_s14 = smov 8  }
  0x14   :  { %51 = dma.hbm_to_vmem [thread:$0]  %s1059_s5, 512, %s46_s22, [#allocation9], %s871_s13, %s871_s13, %s872_s14  }
  0x15   :  { %s873_s17 = smov [#allocation4]   ;;  %s874_s19 = smov [#allocation10]  }
  0x16   :  { %s32_s18 = sshll.u32 %s873_s17, 4  ;;  %s59_s20 = sshll.u32 %s874_s19, 4  ;;  %s33_s18 = int_to_ptr.vmem [resolvable:$true] %s32_s18  ;;  %s60_s20 = int_to_ptr.vmem [resolvable:$true] %s59_s20 }
  0x17   :  { %s762_s24 = scalar_lea.hbm %s1056_s2, 128 }
  0x18   :  { %p763_p8 = scmp.ne.s32.totalorder %s1056_s2, %s762_s24  ;;  %p766_p9 = scmp.lt.u32.totalorder %s762_s24, %s1056_s2 }
  0x1a   :  { %p768_p10 = pnand %p766_p9, %p763_p8 }
  0x1c   :  { %771 = shalt.err (!%p768_p10)
}
  0x1d   :  { %s772_s5 = scalar_lea.vmem %s33_s18, 128  ;;  %p777_p12 = scmp.lt.s32.totalorder %s33_s18, %s33_s18 }
  0x1e   :  { %p773_p11 = scmp.ne.s32.totalorder %s33_s18, %s772_s5  ;;  %p778_p13 = scmp.lt.s32.totalorder %s772_s5, %s772_s5 }
  0x20   :  { %p779_p0 = por %p778_p13, %p777_p12 }
  0x22   :  { %p780_p1 = pnand %p779_p0, %p773_p11 }
  0x24   :  { %783 = shalt.err (!%p780_p1)
}
  0x25   :  { %35 = dma.hbm_to_vmem [thread:$0]  %s1056_s2, 128, %s33_s18, [#allocation5]  }
  0x26   :  { %s784_s16 = scalar_lea.hbm %s1061_s7, 2048 }
  0x27   :  { %p785_p2 = scmp.ne.s32.totalorder %s1061_s7, %s784_s16  ;;  %p788_p3 = scmp.lt.u32.totalorder %s784_s16, %s1061_s7 }
  0x29   :  { %p790_p4 = pnand %p788_p3, %p785_p2 }
  0x2b   :  { %793 = shalt.err (!%p790_p4)
}
  0x2c   :  { %s794_s24 = scalar_lea.vmem %s60_s20, 2048  ;;  %p799_p6 = scmp.lt.s32.totalorder %s60_s20, %s60_s20 }
  0x2d   :  { %p795_p5 = scmp.ne.s32.totalorder %s60_s20, %s794_s24  ;;  %p800_p7 = scmp.lt.s32.totalorder %s794_s24, %s794_s24 }
  0x2f   :  { %p801_p8 = por %p800_p7, %p799_p6 }
  0x31   :  { %p802_p9 = pnand %p801_p8, %p795_p5 }
  0x33   :  { %805 = shalt.err (!%p802_p9)
}
  0x34   :  { %65 = dma.hbm_to_vmem [thread:$0]  %s1061_s7, 2048, %s60_s20, [#allocation9], %s871_s13, %s871_s13, %s872_s14  }
  0x35   :  { %s875_s25 = smov [#allocation11]   ;;  %s806_s5 = scalar_lea.hbm %s1063_s9, 4096 }
  0x36   :  { %s73_s26 = sshll.u32 %s875_s25, 4  ;;  %p807_p10 = scmp.ne.s32.totalorder %s1063_s9, %s806_s5  ;;  %s74_s26 = int_to_ptr.vmem [resolvable:$true] %s73_s26 }
  0x37   :  { %p810_p11 = scmp.lt.u32.totalorder %s806_s5, %s1063_s9 }
  0x39   :  { %p812_p12 = pnand %p810_p11, %p807_p10 }
  0x3b   :  { %815 = shalt.err (!%p812_p12)
}
  0x3c   :  { %s816_s16 = scalar_lea.vmem %s74_s26, 4096  ;;  %p821_p0 = scmp.lt.s32.totalorder %s74_s26, %s74_s26 }
  0x3d   :  { %p817_p13 = scmp.ne.s32.totalorder %s74_s26, %s816_s16  ;;  %p822_p1 = scmp.lt.s32.totalorder %s816_s16, %s816_s16 }
  0x3f   :  { %p823_p2 = por %p822_p1, %p821_p0 }
  0x41   :  { %p824_p3 = pnand %p823_p2, %p817_p13 }
  0x43   :  { %827 = shalt.err (!%p824_p3)
}
  0x44   :  { %s876_s7 = smov 256   ;;  %s877_s13 = smov 16  }
  0x45   :  { %79 = dma.hbm_to_vmem [thread:$0]  %s1063_s9, 4096, %s74_s26, [#allocation12], %s876_s7, %s876_s7, %s877_s13  }
  0x46   :  { %860 = dma.done.wait [#allocation5], 128  }
  0x47   :  { %861 = vsyncadd [#allocation5], 4294967168 }
  0x48   :  { %862 = dma.done.wait [#allocation9], 2560  }
  0x49   :  { %863 = vsyncadd [#allocation9], 4294964736 }
  0x4a   :  { %864 = dma.done.wait [#allocation12], 4096  }
  0x4b   :  { %865 = vsyncadd [#allocation12], 4294963200  ;;  %v878_v0 = vmov 0.0|0.0   ;;  %vm879_vm0 = vmmov 0   ;;  %v880_v1 = vmov 0.0   ;;  %v98_v2 = vld [vmem:[#allocation8] sm:$0xff] }
  0x4c   :  { %645 = vmatprep.subr.bf16.mxu0 %v878_v0  ;;  %651 = vmatprep.subr.bf16.mxu1 %v878_v0  ;;  %v99_v3 = vld [vmem:[#allocation8 + $0x8] sm:$0xff]  ;;  %v96_v4 = vld [vmem:[%s1058_s4] sm:$0xff]  ;;  %v97_v6 = vld [vmem:[%s1058_s4 + $0x8] sm:$0xff]  ;;  %vm176_vm1 = vcmask 130048   ;;  %vm102_vm2 = vcmask 261120   ;;  %vm520_vm5 = vcmask 7168  }
  0x4d   :  { %607 = vmatprep.mubr.msk.f32.mxu1 %vm879_vm0, %v880_v1  ;;  %600 = vmatprep.mubr.msk.f32.mxu0 %vm879_vm0, %v880_v1  ;;  %v646_v5 = vpack.c.bf16 %v99_v3, %v98_v2  ;;  %v100_v7 = vld [vmem:[#allocation8 + $0x10] sm:$0xff]  ;;  %v101_v8 = vld [vmem:[#allocation8 + $0x18] sm:$0xff]  ;;  %v652_v9 = vpack.c.bf16 %v97_v6, %v96_v4  ;;  %v259_v10 = vld [vmem:[#allocation10] sm:$0xff]  ;;  %s882_s27 = smov [#allocation13]  }
  0x4e   :  { %v649_v11 = vpack.c.bf16 %v101_v8, %v100_v7  ;;  %v260_v12 = vld [vmem:[#allocation10 + $0x8] sm:$0xff]  ;;  %v94_v13 = vld [vmem:[%s1055_s1] sm:$0xff]  ;;  %v261_v15 = vld [vmem:[#allocation10 + $0x10] sm:$0xff]  ;;  %s539_s28 = sshll.u32 %s882_s27, 4  ;;  %s540_s28 = int_to_ptr.vmem [resolvable:$true] %s539_s28 }
  0x4f   :  { %647 = vmatpush3.bf16.msra.mxu0 %v646_v5  ;;  %653 = vmatpush3.bf16.msra.mxu1 %v652_v9  ;;  %v655_v14 = vpack.c.bf16 %v260_v12, %v259_v10  ;;  %v262_v16 = vld [vmem:[#allocation10 + $0x18] sm:$0xff]  ;;  %v263_v19 = vld [vmem:[#allocation10 + $0x20] sm:$0xff]  ;;  %v264_v20 = vld [vmem:[#allocation10 + $0x28] sm:$0xff]  ;;  %s828_s5 = scalar_lea.vmem %s540_s28, 128  ;;  %p833_p5 = scmp.lt.s32.totalorder %s540_s28, %s540_s28 }
  0x50   :  { %648 = vmatprep.subr.bf16.mxu0 %v878_v0  ;;  %654 = vmatprep.subr.bf16.mxu1 %v878_v0  ;;  %v95_v17 = vld [vmem:[#allocation4] sm:$0xff]  ;;  %v658_v18 = vpack.c.bf16 %v262_v16, %v261_v15  ;;  %v661_v21 = vpack.c.bf16 %v264_v20, %v263_v19  ;;  %v265_v22 = vld [vmem:[#allocation10 + $0x30] sm:$0xff]  ;;  %v267_v25 = vld [vmem:[#allocation10 + $0x40] sm:$0xff]  ;;  %p829_p4 = scmp.ne.s32.totalorder %s540_s28, %s828_s5  ;;  %p834_p6 = scmp.lt.s32.totalorder %s828_s5, %s828_s5 }
  0x51   :  { %v266_v23 = vld [vmem:[#allocation10 + $0x38] sm:$0xff]  ;;  %v268_v26 = vld [vmem:[#allocation10 + $0x48] sm:$0xff]  ;;  %v269_v28 = vld [vmem:[#allocation10 + $0x50] sm:$0xff] }
  0x52   :  { %608 = vmatmul.mubr.msk.f32.vlgmr.msra.gmra.mrb[0].mxu1 %vm176_vm1, %v94_v13  ;;  %v664_v24 = vpack.c.bf16 %v266_v23, %v265_v22  ;;  %v667_v27 = vpack.c.bf16 %v268_v26, %v267_v25  ;;  %v270_v29 = vld [vmem:[#allocation10 + $0x58] sm:$0xff]  ;;  %v271_v31 = vld [vmem:[#allocation10 + $0x60] sm:$0xff]  ;;  %v272_v32 = vld [vmem:[#allocation10 + $0x68] sm:$0xff]  ;;  %p835_p7 = por %p834_p6, %p833_p5 }
  0x53   :  { %650 = vmatpush3.bf16.msra.mxu0 %v649_v11  ;;  %656 = vmatpush3.bf16.msra.mxu1 %v655_v14  ;;  %v670_v30 = vpack.c.bf16 %v270_v29, %v269_v28  ;;  %v673_v33 = vpack.c.bf16 %v272_v32, %v271_v31  ;;  %v273_v34 = vld [vmem:[#allocation10 + $0x70] sm:$0xff]  ;;  %v274_v35 = vld [vmem:[#allocation10 + $0x78] sm:$0xff]  ;;  %v354_v37 = vld [vmem:[#allocation11 + $0x8] sm:$0xff] }
  0x54   :  { %642 = vmatprep.mubr.msk.f32.mxu1 %vm879_vm0, %v880_v1  ;;  %657 = vmatprep.subr.bf16.mxu1 %v878_v0  ;;  %v676_v36 = vpack.c.bf16 %v274_v35, %v273_v34  ;;  %v356_v38 = vld [vmem:[#allocation11 + $0x18] sm:$0xff]  ;;  %v353_v39 = vld [vmem:[#allocation11] sm:$0xff]  ;;  %v355_v41 = vld [vmem:[#allocation11 + $0x10] sm:$0xff]  ;;  %v387_v34 = vlaneseq  ;;  %p836_p8 = pnand %p835_p7, %p829_p4 }
  0x55   :  { %v678_v40 = vpack.c.bf16 %v356_v38, %v354_v37  ;;  %v358_v42 = vld [vmem:[#allocation11 + $0x28] sm:$0xff]  ;;  %v360_v43 = vld [vmem:[#allocation11 + $0x38] sm:$0xff]  ;;  %v680_v44 = vpack.c.bf16 %v355_v41, %v353_v39  ;;  %v357_v46 = vld [vmem:[#allocation11 + $0x20] sm:$0xff] }
  0x56   :  { %601 = vmatmul.mubr.msk.f32.vlgmr.msra.gmra.mrb[0].mxu0 %vm102_vm2, %v95_v17  ;;  %v682_v45 = vpack.c.bf16 %v360_v43, %v358_v42  ;;  %v359_v47 = vld [vmem:[#allocation11 + $0x30] sm:$0xff]  ;;  %v362_v48 = vld [vmem:[#allocation11 + $0x48] sm:$0xff]  ;;  %v364_v49 = vld [vmem:[#allocation11 + $0x58] sm:$0xff]  ;;  %v388_v35 = vshrl.u32 %v387_v34, 7 }
  0x57   :  { %461 = vmatprep.mubr.f32.mxu0 %v880_v1  ;;  %659 = vmatpush3.bf16.msra.mxu1 %v658_v18  ;;  %v684_v50 = vpack.c.bf16 %v359_v47, %v357_v46  ;;  %v686_v51 = vpack.c.bf16 %v364_v49, %v362_v48  ;;  %v361_v52 = vld [vmem:[#allocation11 + $0x40] sm:$0xff]  ;;  %v363_v53 = vld [vmem:[#allocation11 + $0x50] sm:$0xff]  ;;  %v366_v54 = vld [vmem:[#allocation11 + $0x68] sm:$0xff] }
  0x58   :  { %660 = vmatprep.subr.bf16.mxu1 %v878_v0  ;;  %679 = vmatprep.subr.bf16.mxu0 %v678_v40  ;;  %v368_v55 = vld [vmem:[#allocation11 + $0x78] sm:$0xff]  ;;  %v688_v56 = vpack.c.bf16 %v363_v53, %v361_v52  ;;  %v365_v58 = vld [vmem:[#allocation11 + $0x60] sm:$0xff]  ;;  %v367_v59 = vld [vmem:[#allocation11 + $0x70] sm:$0xff]  ;;  %v393_v39 = vsub.s32 1, %v388_v35 }
  0x59   :  { %681 = vmatpush1.bf16.msra.mxu0 %v680_v44  ;;  %v690_v57 = vpack.c.bf16 %v368_v55, %v366_v54  ;;  %v370_v60 = vld [vmem:[#allocation11 + $0x88] sm:$0xff]  ;;  %v372_v61 = vld [vmem:[#allocation11 + $0x98] sm:$0xff]  ;;  %v692_v62 = vpack.c.bf16 %v367_v59, %v365_v58  ;;  %v371_v1 = vld [vmem:[#allocation11 + $0x90] sm:$0xff] }
  0x5a   :  { %683 = vmatprep.subr.bf16.mxu0 %v682_v45  ;;  %v694_v63 = vpack.c.bf16 %v372_v61, %v370_v60  ;;  %v374_v2 = vld [vmem:[#allocation11 + $0xa8] sm:$0xff]  ;;  %v376_v3 = vld [vmem:[#allocation11 + $0xb8] sm:$0xff]  ;;  %v373_v6 = vld [vmem:[#allocation11 + $0xa0] sm:$0xff]  ;;  %v881_v45 = vmov 0  }
  0x5b   :  { %662 = vmatpush3.bf16.msra.mxu1 %v661_v21  ;;  %v698_v5 = vpack.c.bf16 %v376_v3, %v374_v2  ;;  %v375_v7 = vld [vmem:[#allocation11 + $0xb0] sm:$0xff]  ;;  %v378_v8 = vld [vmem:[#allocation11 + $0xc8] sm:$0xff]  ;;  %v380_v9 = vld [vmem:[#allocation11 + $0xd8] sm:$0xff]  ;;  %726 = vset.pattern.permute.xlu1 %v881_v45  ;;  %v501_v3 = vand.u32 127, %v387_v34 }
  0x5c   :  { %663 = vmatprep.subr.bf16.mxu1 %v878_v0  ;;  %v700_v10 = vpack.c.bf16 %v375_v7, %v373_v6  ;;  %v702_v11 = vpack.c.bf16 %v380_v9, %v378_v8  ;;  %v377_v12 = vld [vmem:[#allocation11 + $0xc0] sm:$0xff]  ;;  %v379_v13 = vld [vmem:[#allocation11 + $0xd0] sm:$0xff]  ;;  %v565_v18 = vld [vmem:[%s1060_s6] ss:$0 sm:$0xff]  ;;  %727 = vset.pattern.permute.xlu0 %v881_v45 }
  0x5d   :  { %685 = vmatpush1.bf16.msra.mxu0 %v684_v50  ;;  %v704_v14 = vpack.c.bf16 %v379_v13, %v377_v12  ;;  %v382_v23 = vld [vmem:[#allocation11 + $0xe8] sm:$0xff]  ;;  %v381_v26 = vld [vmem:[#allocation11 + $0xe0] sm:$0xff]  ;;  %v566_v29 = vld [vmem:[%s1062_s8] ss:$0 sm:$0xff] }
  0x5e   :  { %687 = vmatprep.subr.bf16.mxu0 %v686_v51  ;;  %v385_v37 = vld [vmem:[%s1064_s10] sm:$0x3] }
  0x5f   :  { %665 = vmatpush3.bf16.msra.mxu1 %v664_v24  ;;  %v384_v24 = vld [vmem:[#allocation11 + $0xf8] sm:$0xff]  ;;  %v394_v42 = vrot.slane %v385_v37, %v393_v39 }
  0x60   :  { %666 = vmatprep.subr.bf16.mxu1 %v878_v0  ;;  %v706_v25 = vpack.c.bf16 %v384_v24, %v382_v23  ;;  %v502_v54 = vld [vmem:[%s1057_s3] sm:$0xff] }
  0x61   :  { %689 = vmatpush1.bf16.msra.mxu0 %v688_v56 }
  0x62   :  { %691 = vmatprep.subr.bf16.mxu0 %v690_v57 }
  0x63   :  { %668 = vmatpush3.bf16.msra.mxu1 %v667_v27  ;;  %v383_v27 = vld [vmem:[#allocation11 + $0xf0] sm:$0xff] }
  0x64   :  { %669 = vmatprep.subr.bf16.mxu1 %v878_v0  ;;  %v708_v28 = vpack.c.bf16 %v383_v27, %v381_v26 }
  0x65   :  { %693 = vmatpush1.bf16.msra.mxu0 %v692_v62 }
  0x66   :  { %695 = vmatprep.subr.bf16.mxu0 %v694_v63 }
  0x67   :  { %671 = vmatpush3.bf16.msra.mxu1 %v670_v30 }
  0x68   :  { %672 = vmatprep.subr.bf16.mxu1 %v878_v0 }
  0x6b   :  { %674 = vmatpush3.bf16.msra.mxu1 %v673_v33 }
  0x6c   :  { %675 = vmatprep.subr.bf16.mxu1 %v878_v0  ;;  %v369_v0 = vld [vmem:[#allocation11 + $0x80] sm:$0xff] }
  0x6d   :  { %v696_v4 = vpack.c.bf16 %v371_v1, %v369_v0 }
  0x6f   :  { %677 = vmatpush3.bf16.msra.mxu1 %v676_v36  ;;  %697 = vmatpush1.bf16.msra.mxu0 %v696_v4  ;;  %v389_v36 = vsub.s32 0, %v388_v35 }
  0x70   :  { %699 = vmatprep.subr.bf16.mxu0 %v698_v5 }
  0x71   :  { %v390_v38 = vrot.slane %v385_v37, %v389_v36 }
  0x73   :  { %701 = vmatpush1.bf16.msra.mxu0 %v700_v10  ;;  %v517_v10 = vstv %s1054_s0 }
  0x74   :  { %703 = vmatprep.subr.bf16.mxu0 %v702_v11  ;;  %vm518_vm4 = vcmp.lt.s32.totalorder %v388_v35, %v517_v10 }
  0x77   :  { %705 = vmatpush1.bf16.msra.mxu0 %v704_v14 }
  0x78   :  { %707 = vmatprep.subr.bf16.mxu0 %v706_v25 }
  0x7b   :  { %709 = vmatpush1.bf16.msra.mxu0 %v708_v28 }
 0x125   :  { %v246_v15 = vpop.f32.mrb[0].mxu1 }
 0x126   :  { %v609_v16 = vpop.f32.mrb[1].mxu1 }
 0x129   :  { %v172_v17 = vpop.f32.mrb[0].mxu0 }
 0x12a   :  { %v247_v19 = vadd.f32 %v246_v15, %v172_v17  ;;  %v602_v20 = vpop.f32.mrb[1].mxu0 }
 0x12c   :  { %v257_v21 = vadd.f32 %v565_v18, %v247_v19 }
 0x12e   :  { %v258_v22 = vmax.f32 %v257_v21, 0.0 }
 0x130   :  { %643 = vmatmul.mubr.f32.vlgmr.msra.gmra.mrb[2].mxu1 %v258_v22 }
 0x203   :  { %v348_v30 = vpop.f32.mrb[2].mxu1 }
 0x204   :  { %v349_v31 = vadd.f32 %v566_v29, %v348_v30  ;;  %v644_v32 = vpop.f32.mrb[3].mxu1 }
 0x206   :  { %v352_v33 = vmax.f32 %v349_v31, 0.0 }
 0x208   :  { %462 = vmatmul.mubr.f32.vlgmr.msra.gmra.mrb[2].mxu0 %v352_v33 }
 0x2db   :  { %v463_v40 = vpop.f32.mrb[2].mxu0 }
 0x2dc   :  { %v464_v41 = vadd.f32 %v463_v40, %v390_v38  ;;  %v465_v43 = vpop.f32.mrb[3].mxu0 }
 0x2dd   :  { %v466_v44 = vadd.f32 %v465_v43, %v394_v42 }
 0x2de   :  { %468 = vmax.xlane.f32.xlu0 %v464_v41 }
 0x2e2   :  { %478 = vmax.xlane.f32.xlu0 %v466_v44 }
 0x36b   :  { %v469_v46 = vpop.xlane.xlu0 %468 }
 0x36c   :  { %v470_v47 = vsub.f32 %v464_v41, %v469_v46 }
 0x36e   :  { %v471_v48 = vmul.f32 1.442695, %v470_v47 }
 0x36f   :  { %v479_v49 = vpop.xlane.xlu0 %478 }
 0x370   :  { %v480_v50 = vsub.f32 %v466_v44, %v479_v49  ;;  %728 = vpow2.f32 %v471_v48 }
 0x372   :  { %v481_v51 = vmul.f32 1.442695, %v480_v50 }
 0x374   :  { %730 = vpow2.f32 %v481_v51 }
 0x37a   :  { %v729_v52 = vpop.eup %728 }
 0x37b   :  { %473 = vadd.xlane.f32.xlu1 %v729_v52 }
 0x37e   :  { %v731_v53 = vpop.eup %730 }
 0x37f   :  { %483 = vadd.xlane.f32.xlu1 %v731_v53 }
 0x390   :  { %504 = vperm.xlu1 %726, %v502_v54  }
 0x408   :  { %v474_v55 = vpop.xlane.xlu1 %473 }
 0x409   :  { %732 = vlog2.f32 %v474_v55 }
 0x40c   :  { %v484_v56 = vpop.xlane.xlu1 %483 }
 0x40d   :  { %734 = vlog2.f32 %v484_v56 }
 0x410   :  { %v505_v4 = vpop.permute.xlu1 %504 }
 0x411   :  { %vm506_vm3 = vcmp.eq.s32.totalorder %v501_v3, %v505_v4 }
 0x413   :  { %v733_v57 = vpop.eup %732 }
 0x414   :  { %v476_v58 = vmul.f32 0.6931472, %v733_v57 }
 0x416   :  { %v477_v61 = vsub.f32 %v470_v47, %v476_v58 }
 0x417   :  { %v735_v59 = vpop.eup %734 }
 0x418   :  { %v486_v60 = vmul.f32 0.6931472, %v735_v59 }
 0x41a   :  { %v487_v62 = vsub.f32 %v480_v50, %v486_v60 }
 0x41c   :  { %v488_v63 = vadd.f32 %v487_v62, %v477_v61 }
 0x41e   :  { %489 = vst [vmem:[#allocation13] sm:$0xff] %v488_v63  ;;  %490 = vmax.xlane.f32.xlu0 %v488_v63  ;;  %v507_v6 = vsel %vm506_vm3, %v488_v63, 0.0 }
 0x4ab   :  { %v491_v0 = vpop.xlane.xlu0 %490 }
 0x4ac   :  { %v492_v1 = vsub.f32 %v488_v63, %v491_v0 }
 0x4ae   :  { %v493_v2 = vmul.f32 1.442695, %v492_v1 }
 0x4b0   :  { %736 = vpow2.f32 %v493_v2 }
 0x4ba   :  { %v737_v5 = vpop.eup %736 }
 0x4bb   :  { %495 = vadd.xlane.f32.xlu0 %v737_v5 }
 0x4bf   :  { %508 = vadd.xlane.f32.xlu0 %v507_v6 }
 0x548   :  { %v496_v7 = vpop.xlane.xlu0 %495 }
 0x549   :  { %738 = vlog2.f32 %v496_v7 }
 0x54c   :  { %v509_v12 = vpop.xlane.xlu0 %508 }
 0x553   :  { %v739_v8 = vpop.eup %738 }
 0x554   :  { %v498_v9 = vmul.f32 0.6931472, %v739_v8 }
 0x556   :  { %v499_v11 = vadd.f32 %v498_v9, %v491_v0 }
 0x558   :  { %v510_v13 = vsub.f32 %v499_v11, %v509_v12 }
 0x55a   :  { %v519_v14 = vsel %vm518_vm4, %v510_v13, 0.0 }
 0x55b   :  { %v521_v15 = vsel %vm520_vm5, %v519_v14, 0.0 }
 0x55c   :  { %522 = vadd.xlane.f32.xlu0 %v521_v15 }
 0x55d   :  { %839 = shalt.err (!%p836_p8)
}
 0x55e   :  { %s840_s29 = scalar_lea.hbm %s1065_s11, 128 }
 0x55f   :  { %p841_p9 = scmp.ne.s32.totalorder %s1065_s11, %s840_s29  ;;  %p844_p10 = scmp.lt.u32.totalorder %s840_s29, %s1065_s11 }
 0x561   :  { %p846_p11 = pnand %p844_p10, %p841_p9 }
 0x563   :  { %849 = shalt.err (!%p846_p11)
}
 0x564   :  { %542 = dma.vmem_to_hbm [thread:$0]  %s540_s28, 128, %s1065_s11, [#allocation6]  }
 0x565   :  { %s850_s9 = scalar_lea.hbm %s1066_s12, 16 }
 0x566   :  { %p851_p12 = scmp.ne.s32.totalorder %s1066_s12, %s850_s9  ;;  %p854_p13 = scmp.lt.u32.totalorder %s850_s9, %s1066_s12 }
 0x568   :  { %p856_p0 = pnand %p854_p13, %p851_p12 }
 0x5e9   :  { %v523_v16 = vpop.xlane.xlu0 %522 }
 0x5ea   :  { %v524_v17 = vrot.slane %v523_v16, 4 }
 0x5ec   :  { %v525_v18 = vadd.f32 %v524_v17, %v523_v16 }
 0x5ee   :  { %v526_v19 = vrot.slane %v525_v18, 2 }
 0x5f0   :  { %v527_v20 = vadd.f32 %v526_v19, %v525_v18 }
 0x5f2   :  { %v528_v21 = vrot.slane %v527_v20, 1 }
 0x5f4   :  { %v529_v22 = vadd.f32 %v528_v21, %v527_v20 }
 0x5f6   :  { %710 = vpush %v529_v22 }
 0x627   :  { %s711_s20 = spop %710 }
 0x628   :  { %532 = sst [smem:[#allocation14]] %s711_s20 }
 0x629   :  { %859 = shalt.err (!%p856_p0)
}
 0x62a   :  { %s883_s1 = smov [#allocation14]  }
 0x62b   :  { %550 = dma.smem_to_hbm %s883_s1, 16, %s1066_s12, [#allocation7]  }
 0x62c   :  { %866 = dma.done.wait [#allocation6], 128  }
 0x62d   :  { %867 = vsyncadd [#allocation6], 4294967168 }
 0x62e   :  { %868 = dma.done.wait [#allocation7], 16  }
 0x62f   :  { %869 = vsyncadd [#allocation7], 4294967280 }
 0x630   :  { %557 = sfence }
 0x631   :  { %558 = vsyncpa [#allocation5], 1 }
 0x632   :  { %559 = vsyncpa [#allocation9], 1 }
 0x633   :  { %560 = vsyncpa [#allocation12], 1 }
 0x634   :  { %561 = vsyncpa [#allocation6], 1 }
 0x635   :  { %562 = vsyncpa [#allocation7], 1 }

</bundles_post_ra>
